<compile_context>
chip_gen: v7x
topology: tpu7x:2x2x1
jax: 0.10.0
libtpu: 0.0.40
codegen_flags: <defaults>
</compile_context>

<pallas_src>
import functools
import math

import jax
import jax.numpy as jnp
from jax import lax
from jax.experimental import pallas as pl
from jax.experimental.pallas import tpu as pltpu


def _pe_dropout_kernel(seed_ref, x_ref, pe_ref, o_ref, *, p_drop, keep_thresh):
    # x_ref : (B, TS, D)  lane-dense tile (D -> lanes, TS -> sublanes)
    # pe_ref: (TS, D)     PE rows for this sequence tile
    # seed_ref: (1,) int32 in SMEM
    y = x_ref[...] + pe_ref[...]  # leading-axis broadcast over batch

    if p_drop > 0.0:
        B, TS, D = y.shape
        # Absolute (s, b, d) element index -> dropout mask independent of tiling.
        b_i = lax.broadcasted_iota(jnp.int32, y.shape, 0)
        s_i = lax.broadcasted_iota(jnp.int32, y.shape, 1) + pl.program_id(0) * TS
        d_i = lax.broadcasted_iota(jnp.int32, y.shape, 2)
        ctr = ((s_i * B + b_i) * D + d_i).astype(jnp.uint32)
        seed = seed_ref[0].astype(jnp.uint32)
        # lowbias32-style integer mix: only uint32 mul/xor/shift, no f32 temps.
        # TODO(synk): swap for pltpu.prng_random_bits once the hardware PRNG has
        # an interpret-mode lowering; the mask cannot bit-match torch's RNG anyway.
        h = ctr * jnp.uint32(0x9E3779B1) + seed * jnp.uint32(0x85EBCA77)
        h = h ^ (h >> jnp.uint32(16))
        h = h * jnp.uint32(0x7FEB352D)
        h = h ^ (h >> jnp.uint32(15))
        h = h * jnp.uint32(0x846CA68B)
        h = h ^ (h >> jnp.uint32(16))
        keep = h >= jnp.uint32(keep_thresh)  # P(keep) = 1 - p_drop exactly
        y = jnp.where(keep, y * (1.0 / (1.0 - p_drop)), jnp.zeros_like(y))

    o_ref[...] = y.astype(o_ref.dtype)


def make_pe_table(d_model, max_len=5000, dtype=jnp.float32):
    """Deterministic sinusoidal PE table, shape (max_len, 1, d_model) like torch."""
    position = jnp.arange(max_len, dtype=jnp.float32)[:, None]
    div_term = jnp.exp(
        jnp.arange(0, d_model, 2, dtype=jnp.float32) * (-math.log(10000.0) / d_model)
    )
    pe = jnp.zeros((max_len, d_model), dtype=jnp.float32)
    pe = pe.at[:, 0::2].set(jnp.sin(position * div_term))
    pe = pe.at[:, 1::2].set(jnp.cos(position * div_term))
    return pe[:, None, :].astype(dtype)


def _pick_seq_tile(S, B, D, itemsize, target_block_bytes=2 << 20):
    """Sequence tile: multiple of 8 (or full S), ~2 MiB per block so
    double-buffered in/out blocks fit even v5e's 16 MiB default scoped VMEM."""
    row_bytes = max(1, B * D * itemsize)
    max_rows = max(8, target_block_bytes // row_bytes)
    if S <= 8 or S <= max_rows:
        return S
    return max(8, (min(max_rows, S) // 8) * 8)


def positional_encoding(x, pe_table, *, p_drop=0.1, seed=0, seq_tile=None):
    """Forward pass of PositionalEncoding: dropout(x + pe[:S]).

    x: (seq_len, batch, d_model), identical layout to the PyTorch module.
    """
    S, B, D = x.shape
    assert S <= pe_table.shape[0], "seq_len exceeds the PE table"
    assert 0.0 <= p_drop <= 1.0
    if p_drop >= 1.0:  # nn.Dropout(p=1.0): everything dropped in training mode
        return jnp.zeros_like(x)

    # Lane-dense layout plumbing (wrapper-side): (B, S, D) with a (S, D) PE slab.
    xt = jnp.swapaxes(x, 0, 1)                          # (B, S, D)
    pe = pe_table[:S, 0, :].astype(x.dtype)             # (S, D), matches x dtype

    itemsize = x.dtype.itemsize
    TS = _pick_seq_tile(S, B, D, itemsize) if seq_tile is None else seq_tile
    grid = (pl.cdiv(S, TS),)

    seed_arr = jnp.array([seed], dtype=jnp.int32)
    keep_thresh = min(int(round(float(p_drop) * 2**32)), 2**32 - 1)
    kernel = functools.partial(
        _pe_dropout_kernel, p_drop=float(p_drop), keep_thresh=keep_thresh
    )

    cost = pl.CostEstimate(
        flops=2 * S * B * D,
        transcendentals=0,
        bytes_accessed=(2 * S * B * D + S * D) * itemsize,
    )

    out_t = pl.pallas_call(
        kernel,
        out_shape=jax.ShapeDtypeStruct((B, S, D), x.dtype),
        grid=grid,
        in_specs=[
            pl.BlockSpec(memory_space=pltpu.MemorySpace.SMEM),      # seed scalar
            pl.BlockSpec((B, TS, D), lambda i: (0, i, 0)),          # x tile
            pl.BlockSpec((TS, D), lambda i: (i, 0)),                # pe tile
        ],
        out_specs=pl.BlockSpec((B, TS, D), lambda i: (0, i, 0)),
        compiler_params=pltpu.CompilerParams(dimension_semantics=("parallel",)),
        cost_estimate=cost,
    )(seed_arr, xt, pe)

    return jnp.swapaxes(out_t, 0, 1)                    # back to (S, B, D)


if __name__ == "__main__":
    key = jax.random.PRNGKey(0)
    S, B, D = 8, 2, 32  # seq_len, batch, d_model

    x = jax.random.normal(key, (S, B, D), dtype=jnp.float32)
    pe_table = make_pe_table(D, max_len=5000)
    ref = x + pe_table[:S]

    # 1) Eval-mode forward (dropout disabled): y == x + pe
    y0 = positional_encoding(x, pe_table, p_drop=0.0)
    jax.block_until_ready(y0)
    assert y0.shape == (S, B, D) and y0.dtype == x.dtype
    assert jnp.allclose(y0, ref, atol=1e-6), "x + pe mismatch"

    # 2) Training-mode forward (dropout p=0.1, the PyTorch module default).
    #    Stochastic mask cannot bit-match torch's RNG stream; check semantics:
    #    every nonzero output equals (x + pe) / (1 - p), dropped entries are 0.
    y1 = positional_encoding(x, pe_table, p_drop=0.1, seed=0)
    jax.block_until_ready(y1)
    assert y1.shape == (S, B, D) and y1.dtype == x.dtype
    kept_ok = jnp.where(y1 != 0, jnp.abs(y1 - ref / 0.9) < 1e-5, True)
    assert bool(jnp.all(kept_ok)), "kept values not scaled by 1/(1-p)"

    print("KERNEL_OK")
</pallas_src>

<mosaic_0001>
module attributes {stable_mosaic.version = 11 : i64} {
  func.func @_pe_dropout_kernel(%arg0: i32, %arg1: memref<1xi32, #tpu.memory_space<smem>>, %arg2: memref<2x8x32xf32, #tpu.memory_space<vmem>>, %arg3: memref<8x32xf32, #tpu.memory_space<vmem>>, %arg4: memref<2x8x32xf32, #tpu.memory_space<vmem>>) attributes {dimension_semantics = [#tpu.dimension_semantics<parallel>], iteration_bounds = array<i64: 1>, scalar_prefetch = 0 : i64, scratch_operands = 0 : i64, tpu.core_type = #tpu.core_type<tc>, window_params = [{transform_indices = @transform_0, window_bounds = array<i64: 1>}, {transform_indices = @transform_1, window_bounds = array<i64: 2, 8, 32>}, {transform_indices = @transform_2, window_bounds = array<i64: 8, 32>}, {transform_indices = @transform_3, window_bounds = array<i64: 2, 8, 32>}]} {
    %c0 = arith.constant 0 : index
    %c0_0 = arith.constant 0 : index
    %c0_1 = arith.constant 0 : index
    %0 = vector.load %arg2[%c0, %c0_0, %c0_1] : memref<2x8x32xf32, #tpu.memory_space<vmem>>, vector<2x8x32xf32>
    %c0_2 = arith.constant 0 : index
    %c0_3 = arith.constant 0 : index
    %1 = vector.load %arg3[%c0_2, %c0_3] : memref<8x32xf32, #tpu.memory_space<vmem>>, vector<8x32xf32>
    %2 = vector.shape_cast %1 : vector<8x32xf32> to vector<1x8x32xf32>
    %3 = vector.broadcast %2 : vector<1x8x32xf32> to vector<2x8x32xf32>
    %4 = arith.addf %0, %3 : vector<2x8x32xf32>
    %c0_4 = arith.constant 0 : index
    %c0_5 = arith.constant 0 : index
    %c0_6 = arith.constant 0 : index
    %5 = vector.load %arg4[%c0_4, %c0_5, %c0_6] : memref<2x8x32xf32, #tpu.memory_space<vmem>>, vector<2x8x32xf32>
    tpu.vector_store %arg4[%c0_4, %c0_5, %c0_6], %4 {strides = array<i32>} : memref<2x8x32xf32, #tpu.memory_space<vmem>>, vector<2x8x32xf32>,
    return
  }
  func.func @transform_0(%arg0: i32) -> i32 {
    %c0_i32 = arith.constant 0 : i32
    %c0_i32_0 = arith.constant 0 : i32
    return %c0_i32 : i32
  }
  func.func @transform_1(%arg0: i32) -> (i32, i32, i32) {
    %c0_i32 = arith.constant 0 : i32
    %c0_i32_0 = arith.constant 0 : i32
    %c0_i32_1 = arith.constant 0 : i32
    return %c0_i32, %arg0, %c0_i32_0 : i32, i32, i32
  }
  func.func @transform_2(%arg0: i32) -> (i32, i32) {
    %c0_i32 = arith.constant 0 : i32
    %c0_i32_0 = arith.constant 0 : i32
    return %arg0, %c0_i32 : i32, i32
  }
  func.func @transform_3(%arg0: i32) -> (i32, i32, i32) {
    %c0_i32 = arith.constant 0 : i32
    %c0_i32_0 = arith.constant 0 : i32
    %c0_i32_1 = arith.constant 0 : i32
    return %c0_i32, %arg0, %c0_i32_0 : i32, i32, i32
  }
}

</mosaic_0001>

<bundles_post_ra>
// kernel: tpu_custom_call.1
= control target key start
LH: loop header
LB: loop body
LE: loop exit
PB: predicated region body
PF: predicated region fallthrough
CT: control target
= control target key end

     0   :  { %9 = vsyncpa [#allocation4], 0  ;;  %s212_s0 = inlined_call_operand.<no memory space> [shape: s32[1], index: 0, kind: input, shape index: {}]   ;;  %s213_s1 = inlined_call_operand.hbm [shape: f32[2,8,32], index: 1, kind: input, shape index: {}]   ;;  %s214_s2 = inlined_call_operand.hbm [shape: f32[8,32], index: 2, kind: input, shape index: {}]   ;;  %s215_s3 = inlined_call_operand.hbm [shape: f32[2,8,32], index: 3, kind: output, shape index: {}]  }
   0x1   :  { %10 = vsyncpa [#allocation7], 0 }
   0x2   :  { %11 = vsyncpa [#allocation5], 0  ;;  %s145_s12 = smov [#allocation3]   ;;  %s73_s16 = scalar_lea.hbm %s213_s1, 256 }
   0x3   :  { %s19_s13 = sshll.u32 %s145_s12, 4  ;;  %p74_p0 = scmp.ne.s32.totalorder %s213_s1, %s73_s16  ;;  %s20_s13 = int_to_ptr.vmem [resolvable:$true] %s19_s13 }
   0x4   :  { %p77_p1 = scmp.lt.u32.totalorder %s73_s16, %s213_s1 }
   0x6   :  { %p79_p2 = pnand %p77_p1, %p74_p0 }
   0x8   :  { %82 = shalt.err (!%p79_p2)
}
   0x9   :  { %s83_s20 = scalar_lea.vmem %s20_s13, 256  ;;  %p88_p4 = scmp.lt.s32.totalorder %s20_s13, %s20_s13 }
   0xa   :  { %p84_p3 = scmp.ne.s32.totalorder %s20_s13, %s83_s20  ;;  %p89_p5 = scmp.lt.s32.totalorder %s83_s20, %s83_s20 }
   0xc   :  { %p90_p6 = por %p89_p5, %p88_p4 }
   0xe   :  { %p91_p7 = pnand %p90_p6, %p84_p3 }
  0x10   :  { %94 = shalt.err (!%p91_p7)
}
  0x11   :  { %s146_s21 = smov 128   ;;  %s147_s22 = smov 8  }
  0x12   :  { %25 = dma.hbm_to_vmem [thread:$0]  %s213_s1, 256, %s20_s13, [#allocation4], %s146_s21, %s146_s21, %s147_s22  }
  0x13   :  { %s148_s25 = smov [#allocation6]   ;;  %s95_s29 = scalar_lea.hbm %s214_s2, 128 }
  0x14   :  { %s32_s26 = sshll.u32 %s148_s25, 4  ;;  %p96_p8 = scmp.ne.s32.totalorder %s214_s2, %s95_s29  ;;  %s33_s26 = int_to_ptr.vmem [resolvable:$true] %s32_s26 }
  0x15   :  { %p99_p9 = scmp.lt.u32.totalorder %s95_s29, %s214_s2 }
  0x17   :  { %p101_p10 = pnand %p99_p9, %p96_p8 }
  0x19   :  { %104 = shalt.err (!%p101_p10)
}
  0x1a   :  { %s105_s7 = scalar_lea.vmem %s33_s26, 128  ;;  %p110_p12 = scmp.lt.s32.totalorder %s33_s26, %s33_s26 }
  0x1b   :  { %p106_p11 = scmp.ne.s32.totalorder %s33_s26, %s105_s7  ;;  %p111_p13 = scmp.lt.s32.totalorder %s105_s7, %s105_s7 }
  0x1d   :  { %p112_p0 = por %p111_p13, %p110_p12 }
  0x1f   :  { %p113_p1 = pnand %p112_p0, %p106_p11 }
  0x21   :  { %116 = shalt.err (!%p113_p1)
}
  0x22   :  { %35 = dma.hbm_to_vmem [thread:$0]  %s214_s2, 128, %s33_s26, [#allocation7]  }
  0x23   :  { %139 = dma.done.wait [#allocation4], 256  }
  0x24   :  { %140 = vsyncadd [#allocation4], 4294967040 }
  0x25   :  { %141 = dma.done.wait [#allocation7], 128  }
  0x26   :  { %142 = vsyncadd [#allocation7], 4294967168  ;;  %s149_s9 = smov [#allocation8]   ;;  %v42_v0 = vld [vmem:[#allocation3] sm:$0xff]  ;;  %v44_v1 = vld [vmem:[#allocation6] sm:$0xff]  ;;  %vm47_vm0 = vcmask 261120  }
  0x27   :  { %s55_s10 = sshll.u32 %s149_s9, 4  ;;  %v43_v2 = vld [vmem:[#allocation3 + $0x8] sm:$0xff]  ;;  %v45_v3 = vadd.f32 %v44_v1, %v42_v0  ;;  %s56_s10 = int_to_ptr.vmem [resolvable:$true] %s55_s10 }
  0x28   :  { %v46_v4 = vadd.f32 %v44_v1, %v43_v2  ;;  %s117_s11 = scalar_lea.vmem %s56_s10, 256  ;;  %p122_p3 = scmp.lt.s32.totalorder %s56_s10, %s56_s10 }
  0x29   :  { %48 = vst.msk [vmem:[#allocation8] sm:$0xff] %vm47_vm0, %v45_v3  ;;  %p118_p2 = scmp.ne.s32.totalorder %s56_s10, %s117_s11  ;;  %p123_p4 = scmp.lt.s32.totalorder %s117_s11, %s117_s11 }
  0x2a   :  { %49 = vst.msk [vmem:[#allocation8 + $0x8] sm:$0xff] %vm47_vm0, %v46_v4 }
  0x2b   :  { %p124_p5 = por %p123_p4, %p122_p3 }
  0x2d   :  { %p125_p6 = pnand %p124_p5, %p118_p2 }
  0x2f   :  { %128 = shalt.err (!%p125_p6)
}
  0x30   :  { %s129_s13 = scalar_lea.hbm %s215_s3, 256 }
  0x31   :  { %p130_p7 = scmp.ne.s32.totalorder %s215_s3, %s129_s13  ;;  %p133_p8 = scmp.lt.u32.totalorder %s129_s13, %s215_s3 }
  0x33   :  { %p135_p9 = pnand %p133_p8, %p130_p7 }
  0x35   :  { %138 = shalt.err (!%p135_p9)
}
  0x36   :  { %61 = dma.vmem_to_hbm [thread:$0]  %s56_s10, 256, %s215_s3, [#allocation5], %s146_s21, %s146_s21, %s147_s22  }
  0x37   :  { %143 = dma.done.wait [#allocation5], 256  }
  0x38   :  { %144 = vsyncadd [#allocation5], 4294967040 }
  0x39   :  { %65 = vsyncpa [#allocation4], 1 }
  0x3a   :  { %66 = vsyncpa [#allocation7], 1 }
  0x3b   :  { %67 = vsyncpa [#allocation5], 1 }

</bundles_post_ra>
